<compile_context>
chip_gen: v6e
topology: v6e:2x2x1
jax: 0.10.0
libtpu: 0.0.40
codegen_flags: <defaults>
</compile_context>

<pallas_src>
import functools

import numpy as np
import jax
import jax.numpy as jnp
from jax.experimental import pallas as pl
from jax.experimental.pallas import tpu as pltpu


# --------------------------------------------------------------------------------
# NATTEN 1D relative-position-bias start index (host-side glue; depends only on
# static shapes, never on data).  Reproduces NATTEN's reference formula.
# --------------------------------------------------------------------------------
def _pb_start(i, length, kernel_size, dilation):
    nh = kernel_size // 2
    if dilation <= 1:
        return (nh + int(i < nh) * (nh - i)
                + int(i + nh >= length) * (length - i - 1 - nh))
    if i - nh * dilation < 0:
        return kernel_size - 1 - (i // dilation)
    if i + nh * dilation >= length:
        return (length - i - 1) // dilation
    return nh


# --------------------------------------------------------------------------------
# Fused Pallas kernel (channel-major: rows = channels, cols = time):
#   conv1 (im2col matmul, +bias, ReLU) -> left-pad via bias columns -> NA1D
#   (static shifted-slice gather, softmax over K slots, proj) -> chomp2 -> ReLU
#   -> residual 1x1 conv -> add -> ReLU.   BT batch elements per grid step.
# --------------------------------------------------------------------------------
def _temporal_block_kernel(xcol_ref, w1_ref, b1_ref, wqkv_ref, bqkv_ref,
                           wp_ref, bp_ref, brpb_ref, wd_ref, bd_ref, out_ref,
                           *, L, K, DIL, P, S, NH, CIN, COUT, BT):
    # Fuse the BT batch elements into one (.., BT*L) slab for all matmuls.
    xcat = jnp.concatenate([xcol_ref[b] for b in range(BT)], axis=1)  # (K*CIN, BT*L)

    # ---- conv1 (weight-normed causal dilated conv, im2col form) + chomp1 + relu1
    h = jnp.dot(w1_ref[...], xcat, preferred_element_type=jnp.float32) + b1_ref[...]
    h = jnp.maximum(h, 0.0)                                           # (COUT, BT*L)
    # dropout1: identity (eval mode)

    # ---- qkv projection for the real (conv-output) positions.
    # The attention scale is already folded into the q rows of wqkv / bqkv.
    bqkv = bqkv_ref[...]                                              # (3*COUT, 1)
    qkv = jnp.dot(wqkv_ref[...], h, preferred_element_type=jnp.float32) + bqkv
    bq = bqkv[0:COUT]
    bk = bqkv[COUT:2 * COUT]
    bv = bqkv[2 * COUT:3 * COUT]
    brpb = brpb_ref[...]                                              # (K, L)

    outs = []
    for b in range(BT):
        qkv_b = qkv[:, b * L:(b + 1) * L]                             # (3*COUT, L)

        # F.pad(out, (P, 0)) before NA: a zero column's q/k/v equals the qkv
        # bias, so the P left-pad positions are broadcast bias columns.
        if P > 0:
            q = jnp.concatenate(
                [jnp.broadcast_to(bq, (COUT, P)), qkv_b[0:COUT]], axis=1)[:, 0:L]
            k_full = jnp.concatenate(
                [jnp.broadcast_to(bk, (COUT, P)), qkv_b[COUT:2 * COUT]], axis=1)
            v_full = jnp.concatenate(
                [jnp.broadcast_to(bv, (COUT, P)), qkv_b[2 * COUT:3 * COUT]], axis=1)
        else:
            q = qkv_b[0:COUT]
            k_full = qkv_b[COUT:2 * COUT]
            v_full = qkv_b[2 * COUT:3 * COUT]
        # q: (COUT, L) padded query positions [0, L); k/v: (COUT, LP)

        # NATTEN-1D neighborhood gather as static shifted lane slices.
        # key index for padded query i, slot j:
        #   i >= S (=NH*DIL): i - S + j*DIL      (interior window)
        #   i <  S          : i % DIL + j*DIL    (left-clamped window)
        # (right clamping never applies to the first L queries kept by chomp2).
        logits, vals = [], []
        for j in range(K):
            lo = j * DIL
            inter_k = k_full[:, lo:lo + (L - S)]
            inter_v = v_full[:, lo:lo + (L - S)]
            if NH > 0:
                blk_k = k_full[:, lo:lo + DIL]
                blk_v = v_full[:, lo:lo + DIL]
                kj = jnp.concatenate([blk_k] * NH + [inter_k], axis=1)   # (COUT, L)
                vj = jnp.concatenate([blk_v] * NH + [inter_v], axis=1)
            else:
                kj, vj = inter_k, inter_v
            lj = jnp.sum(q * kj, axis=0, keepdims=True) + brpb[j:j + 1, :]  # (1, L)
            logits.append(lj)
            vals.append(vj)

        # softmax over the K neighborhood slots
        m = logits[0]
        for j in range(1, K):
            m = jnp.maximum(m, logits[j])
        es = [jnp.exp(l - m) for l in logits]
        den = es[0]
        for j in range(1, K):
            den = den + es[j]
        inv = pl.reciprocal(den, approx=True)                         # EUP slot

        o_b = (es[0] * inv) * vals[0]
        for j in range(1, K):
            o_b = o_b + (es[j] * inv) * vals[j]
        outs.append(o_b)                                              # (COUT, L)

    o = jnp.concatenate(outs, axis=1)                                 # (COUT, BT*L)

    # ---- NA output projection; chomp2 is implicit (only L query cols computed);
    #      relu2 (dropout2: identity / eval)
    o = jnp.dot(wp_ref[...], o, preferred_element_type=jnp.float32) + bp_ref[...]
    o = jnp.maximum(o, 0.0)

    # ---- residual: downsample 1x1 conv on x (the last CIN im2col rows are x),
    #      add, final ReLU
    res = jnp.dot(wd_ref[...], xcat[(K - 1) * CIN:K * CIN, :],
                  preferred_element_type=jnp.float32) + bd_ref[...]
    y = jnp.maximum(o + res, 0.0)                                     # (COUT, BT*L)

    for b in range(BT):
        out_ref[b] = y[:, b * L:(b + 1) * L]                          # NCW store


# --------------------------------------------------------------------------------
# Wrapper: layout/weight prep (all cheap host / XLA glue) + pallas_call.
# --------------------------------------------------------------------------------
def temporal_block_forward(x, params, *, kernel_size, dilation):
    """x: (B, Cin, L) float32 (PyTorch NCW)  ->  (B, Cout, L) float32 (NCW)."""
    B, Cin, L = (int(d) for d in x.shape)
    K = int(kernel_size)
    DIL = int(dilation)
    NH = K // 2
    P = DIL * (K - 1)                 # = padding = chomp size
    S = NH * DIL
    LP = L + P
    assert L > S and L >= DIL, "sequence too short for this kernel_size/dilation"

    W1, b1 = params["W1"], params["b1"]
    Wqkv, bqkv, rpb = params["Wqkv"], params["bqkv"], params["rpb"]
    Wp, bp = params["Wp"], params["bp"]
    Wd, bd = params["Wd"], params["bd"]
    COUT = int(W1.shape[-1])
    SCALE = float(COUT) ** -0.5       # head_dim = COUT (num_heads = 1)
    f32 = jnp.float32

    # channel-major ("weight @ activation") weight layouts
    w1T = jnp.transpose(W1.astype(f32), (2, 0, 1)).reshape(COUT, K * Cin)
    b1T = b1.astype(f32).reshape(COUT, 1)
    qscale = jnp.concatenate([jnp.full((COUT, 1), SCALE, f32),
                              jnp.ones((2 * COUT, 1), f32)], axis=0)
    wqkvT = jnp.transpose(Wqkv.astype(f32)) * qscale               # (3*Cout, Cout)
    bqkvT = bqkv.astype(f32).reshape(3 * COUT, 1) * qscale
    wpT = jnp.transpose(Wp.astype(f32))                            # (Cout, Cout)
    bpT = bp.astype(f32).reshape(COUT, 1)
    wdT = jnp.transpose(Wd.astype(f32))                            # (Cout, Cin)
    bdT = bd.astype(f32).reshape(COUT, 1)

    # relative-position-bias table for the L kept query positions: (K, L)
    rpb_np = np.asarray(rpb, np.float32)
    brpbT = np.zeros((K, L), np.float32)
    for t in range(L):
        pb = _pb_start(t, LP, K, DIL)
        for j in range(K):
            brpbT[j, t] = rpb_np[0, pb + j]
    brpbT = jnp.asarray(brpbT)

    # causal left pad + im2col, channel-major: rows = K*Cin taps, cols = time
    xpad = jnp.pad(x.astype(f32), ((0, 0), (0, 0), (P, 0)))        # (B, Cin, LP)
    xcol = jnp.concatenate([xpad[:, :, j * DIL:j * DIL + L] for j in range(K)],
                           axis=1)                                 # (B, K*Cin, L)

    # several batch elements per grid step (amortize weight DMA / step overhead)
    BT = max(d for d in range(1, min(B, 8) + 1) if B % d == 0)

    kernel = functools.partial(_temporal_block_kernel, L=L, K=K, DIL=DIL, P=P,
                               S=S, NH=NH, CIN=Cin, COUT=COUT, BT=BT)

    out = pl.pallas_call(
        kernel,
        out_shape=jax.ShapeDtypeStruct((B, COUT, L), f32),
        grid=(B // BT,),
        in_specs=[
            pl.BlockSpec((BT, K * Cin, L), lambda b: (b, 0, 0)),   # im2col input
            pl.BlockSpec((COUT, K * Cin), lambda b: (0, 0)),       # conv1 weight
            pl.BlockSpec((COUT, 1), lambda b: (0, 0)),             # conv1 bias
            pl.BlockSpec((3 * COUT, COUT), lambda b: (0, 0)),      # qkv weight (q pre-scaled)
            pl.BlockSpec((3 * COUT, 1), lambda b: (0, 0)),         # qkv bias
            pl.BlockSpec((COUT, COUT), lambda b: (0, 0)),          # NA proj weight
            pl.BlockSpec((COUT, 1), lambda b: (0, 0)),             # NA proj bias
            pl.BlockSpec((K, L), lambda b: (0, 0)),                # rpb table
            pl.BlockSpec((COUT, Cin), lambda b: (0, 0)),           # downsample weight
            pl.BlockSpec((COUT, 1), lambda b: (0, 0)),             # downsample bias
        ],
        out_specs=pl.BlockSpec((BT, COUT, L), lambda b: (b, 0, 0)),
        compiler_params=pltpu.CompilerParams(
            dimension_semantics=("parallel",),
            vmem_limit_bytes=32 * 1024 * 1024),
    )(xcol, w1T, b1T, wqkvT, bqkvT, wpT, bpT, brpbT, wdT, bdT)

    return out                                                     # already NCW


# --------------------------------------------------------------------------------
# Deterministic synthetic parameter init (shapes follow TemporalBlock.__init__).
# --------------------------------------------------------------------------------
def init_params(key, n_inputs, n_outputs, kernel_size):
    ks = jax.random.split(key, 10)

    # weight_norm(Conv1d): effective weight = g * v / ||v||, norm per out-channel
    v = jax.random.normal(ks[0], (n_outputs, n_inputs, kernel_size), jnp.float32) * 0.01
    g = 0.5 + jax.random.uniform(ks[1], (n_outputs, 1, 1), jnp.float32)
    norm = jnp.sqrt(jnp.sum(v * v, axis=(1, 2), keepdims=True)) + 1e-12
    w1_eff = g * v / norm                                   # (Cout, Cin, K) torch layout
    W1 = jnp.transpose(w1_eff, (2, 1, 0))                   # (K, Cin, Cout)
    b1 = jax.random.normal(ks[2], (1, n_outputs), jnp.float32) * 0.1

    # NeighborhoodAttention1D(dim=n_outputs, num_heads=1): qkv, rpb, proj
    Wqkv = jax.random.normal(ks[3], (n_outputs, 3 * n_outputs), jnp.float32) * 0.1
    bqkv = jax.random.normal(ks[4], (1, 3 * n_outputs), jnp.float32) * 0.1
    rpb = jax.random.normal(ks[5], (1, 2 * kernel_size - 1), jnp.float32) * 0.02
    Wp = jax.random.normal(ks[6], (n_outputs, n_outputs), jnp.float32) * 0.1
    bp = jax.random.normal(ks[7], (1, n_outputs), jnp.float32) * 0.1

    # downsample 1x1 conv (only when n_inputs != n_outputs, else identity)
    if n_inputs != n_outputs:
        Wd = jax.random.normal(ks[8], (n_inputs, n_outputs), jnp.float32) * 0.01
        bd = jax.random.normal(ks[9], (1, n_outputs), jnp.float32) * 0.1
    else:
        Wd = jnp.eye(n_inputs, dtype=jnp.float32)
        bd = jnp.zeros((1, n_outputs), jnp.float32)

    return dict(W1=W1, b1=b1, Wqkv=Wqkv, bqkv=bqkv, rpb=rpb, Wp=Wp, bp=bp, Wd=Wd, bd=bd)


if __name__ == "__main__":
    # TODO(synk): Dropout1d layers are implemented as identity (eval-mode forward).
    B, Cin, Cout, L = 2, 4, 8, 16
    K, DIL = 3, 2                       # kernel_size=3, dilation=2, padding=(K-1)*DIL

    key = jax.random.PRNGKey(0)
    kx, kp = jax.random.split(key)
    x = jax.random.normal(kx, (B, Cin, L), jnp.float32)
    params = init_params(kp, Cin, Cout, K)

    out = temporal_block_forward(x, params, kernel_size=K, dilation=DIL)
    out = jax.block_until_ready(out)

    assert out.shape == (B, Cout, L), out.shape
    assert bool(jnp.all(jnp.isfinite(out)))
    print("KERNEL_OK")
</pallas_src>

<mosaic_0001>
module attributes {stable_mosaic.version = 11 : i64} {
  func.func @_temporal_block_kernel(%arg0: i32, %arg1: memref<2x12x16xf32, #tpu.memory_space<vmem>>, %arg2: memref<8x12xf32, #tpu.memory_space<vmem>>, %arg3: memref<8x1xf32, #tpu.memory_space<vmem>>, %arg4: memref<24x8xf32, #tpu.memory_space<vmem>>, %arg5: memref<24x1xf32, #tpu.memory_space<vmem>>, %arg6: memref<8x8xf32, #tpu.memory_space<vmem>>, %arg7: memref<8x1xf32, #tpu.memory_space<vmem>>, %arg8: memref<3x16xf32, #tpu.memory_space<vmem>>, %arg9: memref<8x4xf32, #tpu.memory_space<vmem>>, %arg10: memref<8x1xf32, #tpu.memory_space<vmem>>, %arg11: memref<2x8x16xf32, #tpu.memory_space<vmem>>) attributes {dimension_semantics = [#tpu.dimension_semantics<parallel>], iteration_bounds = array<i64: 1>, scalar_prefetch = 0 : i64, scratch_operands = 0 : i64, tpu.core_type = #tpu.core_type<tc>, window_params = [{transform_indices = @transform_0, window_bounds = array<i64: 2, 12, 16>}, {pipeline_mode = #tpu.pipeline_mode<synchronous>, transform_indices = @transform_1, window_bounds = array<i64: 8, 12>}, {pipeline_mode = #tpu.pipeline_mode<synchronous>, transform_indices = @transform_2, window_bounds = array<i64: 8, 1>}, {pipeline_mode = #tpu.pipeline_mode<synchronous>, transform_indices = @transform_3, window_bounds = array<i64: 24, 8>}, {pipeline_mode = #tpu.pipeline_mode<synchronous>, transform_indices = @transform_4, window_bounds = array<i64: 24, 1>}, {pipeline_mode = #tpu.pipeline_mode<synchronous>, transform_indices = @transform_5, window_bounds = array<i64: 8, 8>}, {pipeline_mode = #tpu.pipeline_mode<synchronous>, transform_indices = @transform_6, window_bounds = array<i64: 8, 1>}, {pipeline_mode = #tpu.pipeline_mode<synchronous>, transform_indices = @transform_7, window_bounds = array<i64: 3, 16>}, {pipeline_mode = #tpu.pipeline_mode<synchronous>, transform_indices = @transform_8, window_bounds = array<i64: 8, 4>}, {pipeline_mode = #tpu.pipeline_mode<synchronous>, transform_indices = @transform_9, window_bounds = array<i64: 8, 1>}, {transform_indices = @transform_10, window_bounds = array<i64: 2, 8, 16>}]} {
    %c0 = arith.constant 0 : index
    %c0_0 = arith.constant 0 : index
    %c0_1 = arith.constant 0 : index
    %0 = vector.load %arg1[%c0, %c0_0, %c0_1] : memref<2x12x16xf32, #tpu.memory_space<vmem>>, vector<1x12x16xf32>
    %1 = vector.shape_cast %0 : vector<1x12x16xf32> to vector<12x16xf32>
    %c1 = arith.constant 1 : index
    %c0_2 = arith.constant 0 : index
    %c0_3 = arith.constant 0 : index
    %2 = vector.load %arg1[%c1, %c0_2, %c0_3] : memref<2x12x16xf32, #tpu.memory_space<vmem>>, vector<1x12x16xf32>
    %3 = vector.shape_cast %2 : vector<1x12x16xf32> to vector<12x16xf32>
    %4 = tpu.concatenate %1, %3 in 1 : vector<12x16xf32>, vector<12x16xf32> -> vector<12x32xf32>
    %c0_4 = arith.constant 0 : index
    %c0_5 = arith.constant 0 : index
    %5 = vector.load %arg2[%c0_4, %c0_5] : memref<8x12xf32, #tpu.memory_space<vmem>>, vector<8x12xf32>
    %cst = arith.constant dense<0.000000e+00> : vector<8x32xf32>
    %6 = tpu.matmul %5, %4, %cst {dimension_numbers = #tpu.dot_dimension_numbers<[1], [0], [0], [1], [0, 0, 1, 1], [], []>} : vector<8x12xf32>, vector<12x32xf32>, vector<8x32xf32> -> vector<8x32xf32>
    %c0_6 = arith.constant 0 : index
    %c0_7 = arith.constant 0 : index
    %7 = vector.load %arg3[%c0_6, %c0_7] : memref<8x1xf32, #tpu.memory_space<vmem>>, vector<8x1xf32>
    %8 = vector.broadcast %7 : vector<8x1xf32> to vector<8x32xf32>
    %9 = arith.addf %6, %8 : vector<8x32xf32>
    %cst_8 = arith.constant 0.000000e+00 : f32
    %10 = vector.broadcast %cst_8 : f32 to vector<8x32xf32>
    %11 = arith.maximumf %9, %10 : vector<8x32xf32>
    %c0_9 = arith.constant 0 : index
    %c0_10 = arith.constant 0 : index
    %12 = vector.load %arg5[%c0_9, %c0_10] : memref<24x1xf32, #tpu.memory_space<vmem>>, vector<24x1xf32>
    %c0_11 = arith.constant 0 : index
    %c0_12 = arith.constant 0 : index
    %13 = vector.load %arg4[%c0_11, %c0_12] : memref<24x8xf32, #tpu.memory_space<vmem>>, vector<24x8xf32>
    %cst_13 = arith.constant dense<0.000000e+00> : vector<24x32xf32>
    %14 = tpu.matmul %13, %11, %cst_13 {dimension_numbers = #tpu.dot_dimension_numbers<[1], [0], [0], [1], [0, 0, 1, 1], [], []>} : vector<24x8xf32>, vector<8x32xf32>, vector<24x32xf32> -> vector<24x32xf32>
    %15 = vector.broadcast %12 : vector<24x1xf32> to vector<24x32xf32>
    %16 = arith.addf %14, %15 : vector<24x32xf32>
    %17 = vector.extract_strided_slice %12 {offsets = [0, 0], sizes = [8, 1], strides = [1, 1]} : vector<24x1xf32> to vector<8x1xf32>
    %18 = vector.extract_strided_slice %12 {offsets = [8, 0], sizes = [8, 1], strides = [1, 1]} : vector<24x1xf32> to vector<8x1xf32>
    %19 = vector.extract_strided_slice %12 {offsets = [16, 0], sizes = [8, 1], strides = [1, 1]} : vector<24x1xf32> to vector<8x1xf32>
    %c0_14 = arith.constant 0 : index
    %c0_15 = arith.constant 0 : index
    %20 = vector.load %arg8[%c0_14, %c0_15] : memref<3x16xf32, #tpu.memory_space<vmem>>, vector<3x16xf32>
    %21 = vector.extract_strided_slice %16 {offsets = [0, 0], sizes = [24, 16], strides = [1, 1]} : vector<24x32xf32> to vector<24x16xf32>
    %22 = vector.shape_cast %17 : vector<8x1xf32> to vector<8x1xf32>
    %23 = vector.broadcast %22 : vector<8x1xf32> to vector<8x4xf32>
    %24 = vector.extract_strided_slice %21 {offsets = [0, 0], sizes = [8, 16], strides = [1, 1]} : vector<24x16xf32> to vector<8x16xf32>
    %25 = tpu.concatenate %23, %24 in 1 : vector<8x4xf32>, vector<8x16xf32> -> vector<8x20xf32>
    %26 = vector.extract_strided_slice %25 {offsets = [0, 0], sizes = [8, 16], strides = [1, 1]} : vector<8x20xf32> to vector<8x16xf32>
    %27 = vector.shape_cast %18 : vector<8x1xf32> to vector<8x1xf32>
    %28 = vector.broadcast %27 : vector<8x1xf32> to vector<8x4xf32>
    %29 = vector.extract_strided_slice %21 {offsets = [8, 0], sizes = [8, 16], strides = [1, 1]} : vector<24x16xf32> to vector<8x16xf32>
    %30 = tpu.concatenate %28, %29 in 1 : vector<8x4xf32>, vector<8x16xf32> -> vector<8x20xf32>
    %31 = vector.shape_cast %19 : vector<8x1xf32> to vector<8x1xf32>
    %32 = vector.broadcast %31 : vector<8x1xf32> to vector<8x4xf32>
    %33 = vector.extract_strided_slice %21 {offsets = [16, 0], sizes = [8, 16], strides = [1, 1]} : vector<24x16xf32> to vector<8x16xf32>
    %34 = tpu.concatenate %32, %33 in 1 : vector<8x4xf32>, vector<8x16xf32> -> vector<8x20xf32>
    %35 = vector.extract_strided_slice %30 {offsets = [0, 0], sizes = [8, 14], strides = [1, 1]} : vector<8x20xf32> to vector<8x14xf32>
    %36 = vector.extract_strided_slice %34 {offsets = [0, 0], sizes = [8, 14], strides = [1, 1]} : vector<8x20xf32> to vector<8x14xf32>
    %37 = vector.extract_strided_slice %30 {offsets = [0, 0], sizes = [8, 2], strides = [1, 1]} : vector<8x20xf32> to vector<8x2xf32>
    %38 = vector.extract_strided_slice %34 {offsets = [0, 0], sizes = [8, 2], strides = [1, 1]} : vector<8x20xf32> to vector<8x2xf32>
    %39 = tpu.concatenate %37, %35 in 1 : vector<8x2xf32>, vector<8x14xf32> -> vector<8x16xf32>
    %40 = tpu.concatenate %38, %36 in 1 : vector<8x2xf32>, vector<8x14xf32> -> vector<8x16xf32>
    %41 = arith.mulf %26, %39 : vector<8x16xf32>
    %cst_16 = arith.constant dense<0.000000e+00> : vector<16xf32>
    %42 = vector.multi_reduction <add>, %41, %cst_16 [0] : vector<8x16xf32> to vector<16xf32>
    %43 = vector.shape_cast %42 : vector<16xf32> to vector<1x16xf32>
    %44 = vector.extract_strided_slice %20 {offsets = [0, 0], sizes = [1, 16], strides = [1, 1]} : vector<3x16xf32> to vector<1x16xf32>
    %45 = arith.addf %43, %44 : vector<1x16xf32>
    %46 = vector.extract_strided_slice %30 {offsets = [0, 2], sizes = [8, 14], strides = [1, 1]} : vector<8x20xf32> to vector<8x14xf32>
    %47 = vector.extract_strided_slice %34 {offsets = [0, 2], sizes = [8, 14], strides = [1, 1]} : vector<8x20xf32> to vector<8x14xf32>
    %48 = vector.extract_strided_slice %30 {offsets = [0, 2], sizes = [8, 2], strides = [1, 1]} : vector<8x20xf32> to vector<8x2xf32>
    %49 = vector.extract_strided_slice %34 {offsets = [0, 2], sizes = [8, 2], strides = [1, 1]} : vector<8x20xf32> to vector<8x2xf32>
    %50 = tpu.concatenate %48, %46 in 1 : vector<8x2xf32>, vector<8x14xf32> -> vector<8x16xf32>
    %51 = tpu.concatenate %49, %47 in 1 : vector<8x2xf32>, vector<8x14xf32> -> vector<8x16xf32>
    %52 = arith.mulf %26, %50 : vector<8x16xf32>
    %cst_17 = arith.constant dense<0.000000e+00> : vector<16xf32>
    %53 = vector.multi_reduction <add>, %52, %cst_17 [0] : vector<8x16xf32> to vector<16xf32>
    %54 = vector.shape_cast %53 : vector<16xf32> to vector<1x16xf32>
    %55 = vector.extract_strided_slice %20 {offsets = [1, 0], sizes = [1, 16], strides = [1, 1]} : vector<3x16xf32> to vector<1x16xf32>
    %56 = arith.addf %54, %55 : vector<1x16xf32>
    %57 = vector.extract_strided_slice %30 {offsets = [0, 4], sizes = [8, 14], strides = [1, 1]} : vector<8x20xf32> to vector<8x14xf32>
    %58 = vector.extract_strided_slice %34 {offsets = [0, 4], sizes = [8, 14], strides = [1, 1]} : vector<8x20xf32> to vector<8x14xf32>
    %59 = vector.extract_strided_slice %30 {offsets = [0, 4], sizes = [8, 2], strides = [1, 1]} : vector<8x20xf32> to vector<8x2xf32>
    %60 = vector.extract_strided_slice %34 {offsets = [0, 4], sizes = [8, 2], strides = [1, 1]} : vector<8x20xf32> to vector<8x2xf32>
    %61 = tpu.concatenate %59, %57 in 1 : vector<8x2xf32>, vector<8x14xf32> -> vector<8x16xf32>
    %62 = tpu.concatenate %60, %58 in 1 : vector<8x2xf32>, vector<8x14xf32> -> vector<8x16xf32>
    %63 = arith.mulf %26, %61 : vector<8x16xf32>
    %cst_18 = arith.constant dense<0.000000e+00> : vector<16xf32>
    %64 = vector.multi_reduction <add>, %63, %cst_18 [0] : vector<8x16xf32> to vector<16xf32>
    %65 = vector.shape_cast %64 : vector<16xf32> to vector<1x16xf32>
    %66 = vector.extract_strided_slice %20 {offsets = [2, 0], sizes = [1, 16], strides = [1, 1]} : vector<3x16xf32> to vector<1x16xf32>
    %67 = arith.addf %65, %66 : vector<1x16xf32>
    %68 = arith.maximumf %45, %56 : vector<1x16xf32>
    %69 = arith.maximumf %68, %67 : vector<1x16xf32>
    %70 = arith.subf %45, %69 : vector<1x16xf32>
    %71 = math.exp %70 : vector<1x16xf32>
    %72 = arith.subf %56, %69 : vector<1x16xf32>
    %73 = math.exp %72 : vector<1x16xf32>
    %74 = arith.subf %67, %69 : vector<1x16xf32>
    %75 = math.exp %74 : vector<1x16xf32>
    %76 = arith.addf %71, %73 : vector<1x16xf32>
    %77 = arith.addf %76, %75 : vector<1x16xf32>
    %78 = tpu.reciprocal %77 {approx = true} : vector<1x16xf32> -> vector<1x16xf32>
    %79 = arith.mulf %71, %78 : vector<1x16xf32>
    %80 = vector.broadcast %79 : vector<1x16xf32> to vector<8x16xf32>
    %81 = arith.mulf %80, %40 : vector<8x16xf32>
    %82 = arith.mulf %73, %78 : vector<1x16xf32>
    %83 = vector.broadcast %82 : vector<1x16xf32> to vector<8x16xf32>
    %84 = arith.mulf %83, %51 : vector<8x16xf32>
    %85 = arith.addf %81, %84 : vector<8x16xf32>
    %86 = arith.mulf %75, %78 : vector<1x16xf32>
    %87 = vector.broadcast %86 : vector<1x16xf32> to vector<8x16xf32>
    %88 = arith.mulf %87, %62 : vector<8x16xf32>
    %89 = arith.addf %85, %88 : vector<8x16xf32>
    %90 = vector.extract_strided_slice %16 {offsets = [0, 16], sizes = [24, 16], strides = [1, 1]} : vector<24x32xf32> to vector<24x16xf32>
    %91 = vector.shape_cast %17 : vector<8x1xf32> to vector<8x1xf32>
    %92 = vector.broadcast %91 : vector<8x1xf32> to vector<8x4xf32>
    %93 = vector.extract_strided_slice %90 {offsets = [0, 0], sizes = [8, 16], strides = [1, 1]} : vector<24x16xf32> to vector<8x16xf32>
    %94 = tpu.concatenate %92, %93 in 1 : vector<8x4xf32>, vector<8x16xf32> -> vector<8x20xf32>
    %95 = vector.extract_strided_slice %94 {offsets = [0, 0], sizes = [8, 16], strides = [1, 1]} : vector<8x20xf32> to vector<8x16xf32>
    %96 = vector.shape_cast %18 : vector<8x1xf32> to vector<8x1xf32>
    %97 = vector.broadcast %96 : vector<8x1xf32> to vector<8x4xf32>
    %98 = vector.extract_strided_slice %90 {offsets = [8, 0], sizes = [8, 16], strides = [1, 1]} : vector<24x16xf32> to vector<8x16xf32>
    %99 = tpu.concatenate %97, %98 in 1 : vector<8x4xf32>, vector<8x16xf32> -> vector<8x20xf32>
    %100 = vector.shape_cast %19 : vector<8x1xf32> to vector<8x1xf32>
    %101 = vector.broadcast %100 : vector<8x1xf32> to vector<8x4xf32>
    %102 = vector.extract_strided_slice %90 {offsets = [16, 0], sizes = [8, 16], strides = [1, 1]} : vector<24x16xf32> to vector<8x16xf32>
    %103 = tpu.concatenate %101, %102 in 1 : vector<8x4xf32>, vector<8x16xf32> -> vector<8x20xf32>
    %104 = vector.extract_strided_slice %99 {offsets = [0, 0], sizes = [8, 14], strides = [1, 1]} : vector<8x20xf32> to vector<8x14xf32>
    %105 = vector.extract_strided_slice %103 {offsets = [0, 0], sizes = [8, 14], strides = [1, 1]} : vector<8x20xf32> to vector<8x14xf32>
    %106 = vector.extract_strided_slice %99 {offsets = [0, 0], sizes = [8, 2], strides = [1, 1]} : vector<8x20xf32> to vector<8x2xf32>
    %107 = vector.extract_strided_slice %103 {offsets = [0, 0], sizes = [8, 2], strides = [1, 1]} : vector<8x20xf32> to vector<8x2xf32>
    %108 = tpu.concatenate %106, %104 in 1 : vector<8x2xf32>, vector<8x14xf32> -> vector<8x16xf32>
    %109 = tpu.concatenate %107, %105 in 1 : vector<8x2xf32>, vector<8x14xf32> -> vector<8x16xf32>
    %110 = arith.mulf %95, %108 : vector<8x16xf32>
    %cst_19 = arith.constant dense<0.000000e+00> : vector<16xf32>
    %111 = vector.multi_reduction <add>, %110, %cst_19 [0] : vector<8x16xf32> to vector<16xf32>
    %112 = vector.shape_cast %111 : vector<16xf32> to vector<1x16xf32>
    %113 = vector.extract_strided_slice %20 {offsets = [0, 0], sizes = [1, 16], strides = [1, 1]} : vector<3x16xf32> to vector<1x16xf32>
    %114 = arith.addf %112, %113 : vector<1x16xf32>
    %115 = vector.extract_strided_slice %99 {offsets = [0, 2], sizes = [8, 14], strides = [1, 1]} : vector<8x20xf32> to vector<8x14xf32>
    %116 = vector.extract_strided_slice %103 {offsets = [0, 2], sizes = [8, 14], strides = [1, 1]} : vector<8x20xf32> to vector<8x14xf32>
    %117 = vector.extract_strided_slice %99 {offsets = [0, 2], sizes = [8, 2], strides = [1, 1]} : vector<8x20xf32> to vector<8x2xf32>
    %118 = vector.extract_strided_slice %103 {offsets = [0, 2], sizes = [8, 2], strides = [1, 1]} : vector<8x20xf32> to vector<8x2xf32>
    %119 = tpu.concatenate %117, %115 in 1 : vector<8x2xf32>, vector<8x14xf32> -> vector<8x16xf32>
    %120 = tpu.concatenate %118, %116 in 1 : vector<8x2xf32>, vector<8x14xf32> -> vector<8x16xf32>
    %121 = arith.mulf %95, %119 : vector<8x16xf32>
    %cst_20 = arith.constant dense<0.000000e+00> : vector<16xf32>
    %122 = vector.multi_reduction <add>, %121, %cst_20 [0] : vector<8x16xf32> to vector<16xf32>
    %123 = vector.shape_cast %122 : vector<16xf32> to vector<1x16xf32>
    %124 = vector.extract_strided_slice %20 {offsets = [1, 0], sizes = [1, 16], strides = [1, 1]} : vector<3x16xf32> to vector<1x16xf32>
    %125 = arith.addf %123, %124 : vector<1x16xf32>
    %126 = vector.extract_strided_slice %99 {offsets = [0, 4], sizes = [8, 14], strides = [1, 1]} : vector<8x20xf32> to vector<8x14xf32>
    %127 = vector.extract_strided_slice %103 {offsets = [0, 4], sizes = [8, 14], strides = [1, 1]} : vector<8x20xf32> to vector<8x14xf32>
    %128 = vector.extract_strided_slice %99 {offsets = [0, 4], sizes = [8, 2], strides = [1, 1]} : vector<8x20xf32> to vector<8x2xf32>
    %129 = vector.extract_strided_slice %103 {offsets = [0, 4], sizes = [8, 2], strides = [1, 1]} : vector<8x20xf32> to vector<8x2xf32>
    %130 = tpu.concatenate %128, %126 in 1 : vector<8x2xf32>, vector<8x14xf32> -> vector<8x16xf32>
    %131 = tpu.concatenate %129, %127 in 1 : vector<8x2xf32>, vector<8x14xf32> -> vector<8x16xf32>
    %132 = arith.mulf %95, %130 : vector<8x16xf32>
    %cst_21 = arith.constant dense<0.000000e+00> : vector<16xf32>
    %133 = vector.multi_reduction <add>, %132, %cst_21 [0] : vector<8x16xf32> to vector<16xf32>
    %134 = vector.shape_cast %133 : vector<16xf32> to vector<1x16xf32>
    %135 = vector.extract_strided_slice %20 {offsets = [2, 0], sizes = [1, 16], strides = [1, 1]} : vector<3x16xf32> to vector<1x16xf32>
    %136 = arith.addf %134, %135 : vector<1x16xf32>
    %137 = arith.maximumf %114, %125 : vector<1x16xf32>
    %138 = arith.maximumf %137, %136 : vector<1x16xf32>
    %139 = arith.subf %114, %138 : vector<1x16xf32>
    %140 = math.exp %139 : vector<1x16xf32>
    %141 = arith.subf %125, %138 : vector<1x16xf32>
    %142 = math.exp %141 : vector<1x16xf32>
    %143 = arith.subf %136, %138 : vector<1x16xf32>
    %144 = math.exp %143 : vector<1x16xf32>
    %145 = arith.addf %140, %142 : vector<1x16xf32>
    %146 = arith.addf %145, %144 : vector<1x16xf32>
    %147 = tpu.reciprocal %146 {approx = true} : vector<1x16xf32> -> vector<1x16xf32>
    %148 = arith.mulf %140, %147 : vector<1x16xf32>
    %149 = vector.broadcast %148 : vector<1x16xf32> to vector<8x16xf32>
    %150 = arith.mulf %149, %109 : vector<8x16xf32>
    %151 = arith.mulf %142, %147 : vector<1x16xf32>
    %152 = vector.broadcast %151 : vector<1x16xf32> to vector<8x16xf32>
    %153 = arith.mulf %152, %120 : vector<8x16xf32>
    %154 = arith.addf %150, %153 : vector<8x16xf32>
    %155 = arith.mulf %144, %147 : vector<1x16xf32>
    %156 = vector.broadcast %155 : vector<1x16xf32> to vector<8x16xf32>
    %157 = arith.mulf %156, %131 : vector<8x16xf32>
    %158 = arith.addf %154, %157 : vector<8x16xf32>
    %159 = tpu.concatenate %89, %158 in 1 : vector<8x16xf32>, vector<8x16xf32> -> vector<8x32xf32>
    %c0_22 = arith.constant 0 : index
    %c0_23 = arith.constant 0 : index
    %160 = vector.load %arg6[%c0_22, %c0_23] : memref<8x8xf32, #tpu.memory_space<vmem>>, vector<8x8xf32>
    %cst_24 = arith.constant dense<0.000000e+00> : vector<8x32xf32>
    %161 = tpu.matmul %160, %159, %cst_24 {dimension_numbers = #tpu.dot_dimension_numbers<[1], [0], [0], [1], [0, 0, 1, 1], [], []>} : vector<8x8xf32>, vector<8x32xf32>, vector<8x32xf32> -> vector<8x32xf32>
    %c0_25 = arith.constant 0 : index
    %c0_26 = arith.constant 0 : index
    %162 = vector.load %arg7[%c0_25, %c0_26] : memref<8x1xf32, #tpu.memory_space<vmem>>, vector<8x1xf32>
    %163 = vector.broadcast %162 : vector<8x1xf32> to vector<8x32xf32>
    %164 = arith.addf %161, %163 : vector<8x32xf32>
    %cst_27 = arith.constant 0.000000e+00 : f32
    %165 = vector.broadcast %cst_27 : f32 to vector<8x32xf32>
    %166 = arith.maximumf %164, %165 : vector<8x32xf32>
    %c0_28 = arith.constant 0 : index
    %c0_29 = arith.constant 0 : index
    %167 = vector.load %arg9[%c0_28, %c0_29] : memref<8x4xf32, #tpu.memory_space<vmem>>, vector<8x4xf32>
    %168 = vector.extract_strided_slice %4 {offsets = [8, 0], sizes = [4, 32], strides = [1, 1]} : vector<12x32xf32> to vector<4x32xf32>
    %cst_30 = arith.constant dense<0.000000e+00> : vector<8x32xf32>
    %169 = tpu.matmul %167, %168, %cst_30 {dimension_numbers = #tpu.dot_dimension_numbers<[1], [0], [0], [1], [0, 0, 1, 1], [], []>} : vector<8x4xf32>, vector<4x32xf32>, vector<8x32xf32> -> vector<8x32xf32>
    %c0_31 = arith.constant 0 : index
    %c0_32 = arith.constant 0 : index
    %170 = vector.load %arg10[%c0_31, %c0_32] : memref<8x1xf32, #tpu.memory_space<vmem>>, vector<8x1xf32>
    %171 = vector.broadcast %170 : vector<8x1xf32> to vector<8x32xf32>
    %172 = arith.addf %169, %171 : vector<8x32xf32>
    %173 = arith.addf %166, %172 : vector<8x32xf32>
    %cst_33 = arith.constant 0.000000e+00 : f32
    %174 = vector.broadcast %cst_33 : f32 to vector<8x32xf32>
    %175 = arith.maximumf %173, %174 : vector<8x32xf32>
    %176 = vector.extract_strided_slice %175 {offsets = [0, 0], sizes = [8, 16], strides = [1, 1]} : vector<8x32xf32> to vector<8x16xf32>
    %c0_34 = arith.constant 0 : index
    %c0_35 = arith.constant 0 : index
    %c0_36 = arith.constant 0 : index
    %177 = vector.load %arg11[%c0_34, %c0_35, %c0_36] : memref<2x8x16xf32, #tpu.memory_space<vmem>>, vector<1x8x16xf32>
    %178 = vector.shape_cast %177 : vector<1x8x16xf32> to vector<8x16xf32>
    %179 = vector.shape_cast %176 : vector<8x16xf32> to vector<1x8x16xf32>
    tpu.vector_store %arg11[%c0_34, %c0_35, %c0_36], %179 {strides = array<i32>} : memref<2x8x16xf32, #tpu.memory_space<vmem>>, vector<1x8x16xf32>,
    %180 = vector.extract_strided_slice %175 {offsets = [0, 16], sizes = [8, 16], strides = [1, 1]} : vector<8x32xf32> to vector<8x16xf32>
    %c1_37 = arith.constant 1 : index
    %c0_38 = arith.constant 0 : index
    %c0_39 = arith.constant 0 : index
    %181 = vector.load %arg11[%c1_37, %c0_38, %c0_39] : memref<2x8x16xf32, #tpu.memory_space<vmem>>, vector<1x8x16xf32>
    %182 = vector.shape_cast %181 : vector<1x8x16xf32> to vector<8x16xf32>
    %183 = vector.shape_cast %180 : vector<8x16xf32> to vector<1x8x16xf32>
    tpu.vector_store %arg11[%c1_37, %c0_38, %c0_39], %183 {strides = array<i32>} : memref<2x8x16xf32, #tpu.memory_space<vmem>>, vector<1x8x16xf32>,
    return
  }
  func.func @transform_0(%arg0: i32) -> (i32, i32, i32) {
    %c0_i32 = arith.constant 0 : i32
    %c0_i32_0 = arith.constant 0 : i32
    %c0_i32_1 = arith.constant 0 : i32
    return %arg0, %c0_i32, %c0_i32_0 : i32, i32, i32
  }
  func.func @transform_1(%arg0: i32) -> (i32, i32) {
    %c0_i32 = arith.constant 0 : i32
    %c0_i32_0 = arith.constant 0 : i32
    %c0_i32_1 = arith.constant 0 : i32
    return %c0_i32, %c0_i32_0 : i32, i32
  }
  func.func @transform_2(%arg0: i32) -> (i32, i32) {
    %c0_i32 = arith.constant 0 : i32
    %c0_i32_0 = arith.constant 0 : i32
    %c0_i32_1 = arith.constant 0 : i32
    return %c0_i32, %c0_i32_0 : i32, i32
  }
  func.func @transform_3(%arg0: i32) -> (i32, i32) {
    %c0_i32 = arith.constant 0 : i32
    %c0_i32_0 = arith.constant 0 : i32
    %c0_i32_1 = arith.constant 0 : i32
    return %c0_i32, %c0_i32_0 : i32, i32
  }
  func.func @transform_4(%arg0: i32) -> (i32, i32) {
    %c0_i32 = arith.constant 0 : i32
    %c0_i32_0 = arith.constant 0 : i32
    %c0_i32_1 = arith.constant 0 : i32
    return %c0_i32, %c0_i32_0 : i32, i32
  }
  func.func @transform_5(%arg0: i32) -> (i32, i32) {
    %c0_i32 = arith.constant 0 : i32
    %c0_i32_0 = arith.constant 0 : i32
    %c0_i32_1 = arith.constant 0 : i32
    return %c0_i32, %c0_i32_0 : i32, i32
  }
  func.func @transform_6(%arg0: i32) -> (i32, i32) {
    %c0_i32 = arith.constant 0 : i32
    %c0_i32_0 = arith.constant 0 : i32
    %c0_i32_1 = arith.constant 0 : i32
    return %c0_i32, %c0_i32_0 : i32, i32
  }
  func.func @transform_7(%arg0: i32) -> (i32, i32) {
    %c0_i32 = arith.constant 0 : i32
    %c0_i32_0 = arith.constant 0 : i32
    %c0_i32_1 = arith.constant 0 : i32
    return %c0_i32, %c0_i32_0 : i32, i32
  }
  func.func @transform_8(%arg0: i32) -> (i32, i32) {
    %c0_i32 = arith.constant 0 : i32
    %c0_i32_0 = arith.constant 0 : i32
    %c0_i32_1 = arith.constant 0 : i32
    return %c0_i32, %c0_i32_0 : i32, i32
  }
  func.func @transform_9(%arg0: i32) -> (i32, i32) {
    %c0_i32 = arith.constant 0 : i32
    %c0_i32_0 = arith.constant 0 : i32
    %c0_i32_1 = arith.constant 0 : i32
    return %c0_i32, %c0_i32_0 : i32, i32
  }
  func.func @transform_10(%arg0: i32) -> (i32, i32, i32) {
    %c0_i32 = arith.constant 0 : i32
    %c0_i32_0 = arith.constant 0 : i32
    %c0_i32_1 = arith.constant 0 : i32
    return %arg0, %c0_i32, %c0_i32_0 : i32, i32, i32
  }
}

</mosaic_0001>

<bundles_post_ra>
// kernel: tpu_custom_call.1
= control target key start
LH: loop header
LB: loop body
LE: loop exit
PB: predicated region body
PF: predicated region fallthrough
CT: control target
= control target key end

     0   :  { %s790_s15 = smov 16   ;;  %v791_v1 = vmov 0.0   ;;  %vm792_vm0 = vmmov 0   ;;  %s998_s0 = inlined_call_operand.vmem [shape: f32[2,12,16], index: 0, kind: input, shape index: {}]   ;;  %s999_s1 = inlined_call_operand.vmem [shape: f32[8,12], index: 1, kind: input, shape index: {}]   ;;  %s1000_s2 = inlined_call_operand.vmem [shape: f32[8,1], index: 2, kind: input, shape index: {}]   ;;  %s1001_s3 = inlined_call_operand.vmem [shape: f32[24,8], index: 3, kind: input, shape index: {}]   ;;  %s1002_s4 = inlined_call_operand.vmem [shape: f32[24,1], index: 4, kind: input, shape index: {}]   ;;  %s1003_s5 = inlined_call_operand.vmem [shape: f32[8,8], index: 5, kind: input, shape index: {}]   ;;  %s1004_s6 = inlined_call_operand.vmem [shape: f32[8,1], index: 6, kind: input, shape index: {}]   ;;  %s1005_s7 = inlined_call_operand.vmem [shape: f32[3,16], index: 7, kind: input, shape index: {}]   ;;  %s1006_s8 = inlined_call_operand.vmem [shape: f32[8,4], index: 8, kind: input, shape index: {}]   ;;  %s1007_s9 = inlined_call_operand.vmem [shape: f32[8,1], index: 9, kind: input, shape index: {}]   ;;  %s1008_s10 = inlined_call_operand.hbm [shape: f32[2,8,16], index: 10, kind: output, shape index: {}]  }
   0x1   :  { %v689_v0 = vld [vmem:[%s998_s0 + $0x18] sm:$0xf]  ;;  %709 = vmatprep.subr.mxu0 %v791_v1  ;;  %v688_v2 = vld [vmem:[%s998_s0 + $0x10] sm:$0xff]  ;;  %713 = vmatprep.mubr.msk.f32.mxu0 %vm792_vm0, %v791_v1  ;;  %v53_v3 = vld [vmem:[%s1000_s2] sm:$0xff] }
   0x2   :  { %45 = vrot.lane.b32.xlu0 %v689_v0, %s790_s15  ;;  %716 = vmatprep.subr.mxu1 %v791_v1 }
   0x3   :  { %15 = vsyncpa [#allocation3], 0  ;;  %v793_v4 = vmov 0   ;;  %718 = vmatprep.mubr.msk.f32.mxu1 %vm792_vm0, %v791_v1  ;;  %v139_v5 = vld [vmem:[%s1002_s4 + $0x8] sm:$0xff]  ;;  %vm49_vm1 = vcmask 130048   ;;  %vm63_vm2 = vcmask 1043456  }
   0x4   :  { %750 = vset.pattern.permute.xlu1 %v793_v4  ;;  %751 = vset.pattern.permute.xlu0 %v793_v4  ;;  %v37_v6 = vld [vmem:[%s998_s0 + $0x8] sm:$0xf]  ;;  %v36_v9 = vld [vmem:[%s998_s0] sm:$0xff]  ;;  %vm59_vm3 = vcmask 97280   ;;  %vm159_vm4 = vcmask 64512   ;;  %v143_v21 = vld [vmem:[%s1001_s3 + $0x10] sm:$0xff] }
   0x5   :  { %56 = vperm.xlu1 %750, %v53_v3   ;;  %v52_v11 = vld [vmem:[%s999_s1] sm:$0xff]  ;;  %v142_v20 = vld [vmem:[%s1001_s3 + $0x8] sm:$0xff]  ;;  %s794_s13 = smov 4   ;;  %s795_s14 = smov 116   ;;  %v140_v28 = vld [vmem:[%s1002_s4 + $0x10] sm:$0xff]  ;;  %vm254_vm5 = vcmask 31744  }
   0x6   :  { %43 = vrot.lane.b32.xlu0 %v688_v2, %s790_s15  ;;  %v138_v13 = vld [vmem:[%s1002_s4] sm:$0xff]  ;;  %s797_s18 = smov 126   ;;  %s798_s19 = smov 124   ;;  %vm270_vm6 = vcmask 15360  }
   0x7   :  { %v141_v19 = vld [vmem:[%s1001_s3] sm:$0xff]  ;;  %s796_s3 = smov 2   ;;  %s800_s24 = smov [#allocation2]  }
   0x8   :  { %s677_s25 = sshll.u32 %s800_s24, 4  ;;  %s678_s25 = int_to_ptr.vmem [resolvable:$true] %s677_s25 }
   0x9   :  { %151 = vperm.xlu1 %750, %v139_v5   ;;  %p773_p1 = scmp.lt.s32.totalorder %s678_s25, %s678_s25 }
   0xa   :  { %146 = vperm.xlu0 %751, %v138_v13  }
  0x74   :  { %v46_v7 = vpop.permute.xlu0 %45 }
  0x75   :  { %v882_v8 = vsel %vm49_vm1, %v37_v6, %v46_v7 }
  0x76   :  { %710 = vmatpush3.msk.msra.mxu0 %vm63_vm2, %v882_v8 }
  0x77   :  { %711 = vmatprep.subr.mxu0 %v791_v1 }
  0x78   :  { %v44_v10 = vpop.permute.xlu0 %43 }
  0x79   :  { %v50_v12 = vsel %vm49_vm1, %v36_v9, %v44_v10 }
  0x7a   :  { %712 = vmatpush3.msra.mxu0 %v50_v12  ;;  %v503_v12 = vld [vmem:[%s1004_s6] sm:$0xff] }
  0x7b   :  { %714 = vmatmul.mubr.msk.f32.vlgmr.msra.gmra.mxu0 %vm59_vm3, %v52_v11  ;;  %727 = vmatprep.subr.mxu0 %v791_v1 }
  0x7c   :  { %729 = vmatprep.mubr.msk.f32.mxu0 %vm792_vm0, %v791_v1 }
  0x80   :  { %v57_v14 = vpop.permute.xlu1 %56 }
  0x84   :  { %v152_v24 = vpop.permute.xlu1 %151 }
  0x85   :  { %v147_v30 = vpop.permute.xlu0 %146 }
 0x13b   :  { %v133_v15 = vpop.f32.mrf.mxu0 }
 0x13c   :  { %v134_v16 = vadd.f32 %v133_v15, %v57_v14 }
 0x13d   :  { %v715_v17 = vpop.f32.mrf.mxu0 }
 0x13e   :  { %v137_v18 = vmax.f32 %v134_v16, 0.0  ;;  %v249_v17 = vld [vmem:[%s1005_s7] sm:$0x7] }
 0x140   :  { %717 = vmatpush3.msra.mxu1 %v137_v18 }
 0x141   :  { %719 = vmatmul.mubr.msk.f32.vlgmr.msra.gmra.mxu1 %vm159_vm4, %v141_v19 }
 0x142   :  { %721 = vmatprep.mubr.msk.f32.mxu1 %vm792_vm0, %v791_v1 }
 0x145   :  { %722 = vmatmul.mubr.msk.f32.gmra.mxu1 %vm159_vm4, %v142_v20 }
 0x146   :  { %724 = vmatprep.mubr.msk.f32.mxu1 %vm792_vm0, %v791_v1 }
 0x149   :  { %725 = vmatmul.mubr.msk.f32.gmra.mxu1 %vm159_vm4, %v143_v21 }
 0x201   :  { %v235_v22 = vpop.f32.mrf.mxu1 }
 0x202   :  { %v236_v32 = vadd.f32 %v235_v22, %v147_v30 }
 0x203   :  { %v720_v23 = vpop.f32.mrf.mxu1 }
 0x205   :  { %v240_v25 = vpop.f32.mrf.mxu1 }
 0x206   :  { %v241_v26 = vadd.f32 %v240_v25, %v152_v24 }
 0x207   :  { %v723_v27 = vpop.f32.mrf.mxu1 }
 0x208   :  { %257 = vrot.lane.b32.xlu0 %v241_v26, %s794_s13  ;;  %380 = vrot.lane.b32.xlu1 %v241_v26, %s795_s14 }
 0x209   :  { %v245_v29 = vpop.f32.mrf.mxu1 }
 0x20b   :  { %v726_v31 = vpop.f32.mrf.mxu1 }
 0x20c   :  { %156 = vperm.xlu1 %750, %v140_v28  }
 0x210   :  { %376 = vrot.lane.b32.xlu1 %v236_v32, %s795_s14 }
 0x27a   :  { %v381_v33 = vpop.permute.xlu1 %380  ;;  %v258_v35 = vpop.permute.xlu0 %257 }
 0x27b   :  { %v383_v34 = vsel %vm254_vm5, %v152_v24, %v381_v33  ;;  %v260_v36 = vsel %vm254_vm5, %v152_v24, %v258_v35 }
 0x27c   :  { %389 = vrot.lane.b32.xlu1 %v383_v34, %s796_s3  ;;  %407 = vrot.lane.b32.xlu0 %v383_v34, %s797_s18 }
 0x280   :  { %424 = vrot.lane.b32.xlu0 %v383_v34, %s798_s19 }
 0x284   :  { %251 = vrot.lane.b32.xlu0 %v236_v32, %s794_s13 }
 0x287   :  { %v157_v37 = vpop.permute.xlu1 %156 }
 0x288   :  { %v246_v38 = vadd.f32 %v245_v29, %v157_v37  ;;  %267 = vrot.lane.b32.xlu0 %v260_v36, %s796_s3 }
 0x28a   :  { %384 = vrot.lane.b32.xlu1 %v246_v38, %s795_s14 }
 0x28b   :  { %v377_v41 = vpop.permute.xlu1 %376 }
 0x28c   :  { %262 = vrot.lane.b32.xlu0 %v246_v38, %s794_s13  ;;  %v379_v58 = vsel %vm254_vm5, %v147_v30, %v377_v41 }
 0x28e   :  { %286 = vrot.lane.b32.xlu1 %v260_v36, %s797_s18 }
 0x292   :  { %303 = vrot.lane.b32.xlu1 %v260_v36, %s798_s19 }
 0x2ee   :  { %v408_v39 = vpop.permute.xlu0 %407  ;;  %v390_v43 = vpop.permute.xlu1 %389 }
 0x2ef   :  { %v410_v53 = vsel %vm270_vm6, %v408_v39, %v383_v34  ;;  %v392_v63 = vsel %vm270_vm6, %v383_v34, %v390_v43 }
 0x2f0   :  { %v415_v61 = vmul.f32 %v410_v53, %v379_v58  ;;  %v398_v13 = vmul.f32 %v392_v63, %v379_v58 }
 0x2f2   :  { %v425_v40 = vpop.permute.xlu0 %424  ;;  %v416_v9 = vsel %vm49_vm1, %v415_v61, 0.0  ;;  %v399_v22 = vsel %vm49_vm1, %v398_v13, 0.0 }
 0x2f3   :  { %v427_v59 = vsel %vm270_vm6, %v425_v40, %v408_v39  ;;  %v417_v18 = vrot.slane %v416_v9, 4  ;;  %v400_v29 = vrot.slane %v399_v22, 4 }
 0x2f4   :  { %v432_v3 = vmul.f32 %v427_v59, %v379_v58 }
 0x2f5   :  { %v418_v26 = vadd.f32 %v417_v18, %v416_v9 }
 0x2f6   :  { %v252_v42 = vpop.permute.xlu0 %251  ;;  %v433_v15 = vsel %vm49_vm1, %v432_v3, 0.0 }
 0x2f7   :  { %v255_v45 = vsel %vm254_vm5, %v147_v30, %v252_v42  ;;  %v434_v23 = vrot.slane %v433_v15, 4  ;;  %v419_v33 = vrot.slane %v418_v26, 2 }
 0x2f9   :  { %v435_v30 = vadd.f32 %v434_v23, %v433_v15  ;;  %v420_v40 = vadd.f32 %v419_v33, %v418_v26  ;;  %v352_v23 = vlaneseq }
 0x2fa   :  { %v268_v44 = vpop.permute.xlu0 %267 }
 0x2fb   :  { %v271_v46 = vsel %vm270_vm6, %v260_v36, %v268_v44 }
 0x2fc   :  { %v277_v47 = vmul.f32 %v271_v46, %v255_v45  ;;  %v385_v48 = vpop.permute.xlu1 %384  ;;  %v421_v46 = vrot.slane %v420_v40, 1 }
 0x2fd   :  { %v930_v49 = vsel %vm254_vm5, %v157_v37, %v385_v48 }
 0x2fe   :  { %v278_v50 = vsel %vm49_vm1, %v277_v47, 0.0  ;;  %v263_v51 = vpop.permute.xlu0 %262  ;;  %411 = vrot.lane.b32.xlu0 %v930_v49, %s797_s18  ;;  %394 = vrot.lane.b32.xlu1 %v930_v49, %s796_s3 }
 0x2ff   :  { %v279_v52 = vrot.slane %v278_v50, 4  ;;  %v939_v56 = vsel %vm254_vm5, %v157_v37, %v263_v51  ;;  %v436_v37 = vrot.slane %v435_v30, 2 }
 0x300   :  { %v287_v54 = vpop.permute.xlu1 %286 }
 0x301   :  { %v280_v55 = vadd.f32 %v279_v52, %v278_v50  ;;  %v289_v57 = vsel %vm270_vm6, %v287_v54, %v260_v36  ;;  %v401_v36 = vadd.f32 %v400_v29, %v399_v22  ;;  %v437_v44 = vadd.f32 %v436_v37, %v435_v30 }
 0x302   :  { %v294_v60 = vmul.f32 %v289_v57, %v255_v45  ;;  %273 = vrot.lane.b32.xlu0 %v939_v56, %s796_s3  ;;  %428 = vrot.lane.b32.xlu1 %v930_v49, %s798_s19 }
 0x303   :  { %v281_v62 = vrot.slane %v280_v55, 2  ;;  %v402_v43 = vrot.slane %v401_v36, 2  ;;  %v438_v50 = vrot.slane %v437_v44, 1 }
 0x304   :  { %v295_v0 = vsel %vm49_vm1, %v294_v60, 0.0  ;;  %v304_v2 = vpop.permute.xlu1 %303 }
 0x305   :  { %v282_v4 = vadd.f32 %v281_v62, %v280_v55  ;;  %v296_v5 = vrot.slane %v295_v0, 4  ;;  %v306_v6 = vsel %vm270_vm6, %v304_v2, %v287_v54  ;;  %v403_v48 = vadd.f32 %v402_v43, %v401_v36 }
 0x306   :  { %v311_v7 = vmul.f32 %v306_v6, %v255_v45  ;;  %307 = vrot.lane.b32.xlu0 %v939_v56, %s798_s19  ;;  %290 = vrot.lane.b32.xlu1 %v939_v56, %s797_s18  ;;  %v422_v54 = vadd.f32 %v421_v46, %v420_v40  ;;  %v439_v59 = vadd.f32 %v438_v50, %v437_v44 }
 0x307   :  { %v283_v10 = vrot.slane %v282_v4, 1  ;;  %v297_v11 = vadd.f32 %v296_v5, %v295_v0  ;;  %v404_v58 = vrot.slane %v403_v48, 1 }
 0x308   :  { %v312_v14 = vsel %vm49_vm1, %v311_v7, 0.0  ;;  %v423_v63 = vadd.f32 %v422_v54, %v249_v17  ;;  %v440_v2 = vadd.f32 %v439_v59, %v249_v17 }
 0x309   :  { %v284_v16 = vadd.f32 %v283_v10, %v282_v4  ;;  %v298_v19 = vrot.slane %v297_v11, 2  ;;  %v313_v20 = vrot.slane %v312_v14, 4  ;;  %v405_v0 = vadd.f32 %v404_v58, %v403_v48 }
 0x30a   :  { %506 = vperm.xlu0 %751, %v503_v12   ;;  %v442_v3 = vrot.slane %v423_v63, 1  ;;  %v446_v5 = vrot.slane %v440_v2, 2 }
 0x30b   :  { %v285_v21 = vadd.f32 %v284_v16, %v249_v17  ;;  %v299_v24 = vadd.f32 %v298_v19, %v297_v11  ;;  %v314_v25 = vadd.f32 %v313_v20, %v312_v14  ;;  %v406_v4 = vadd.f32 %v405_v0, %v249_v17 }
 0x30d   :  { %v300_v27 = vrot.slane %v299_v24, 1  ;;  %v315_v28 = vrot.slane %v314_v25, 2  ;;  %v444_v6 = vmax.f32 %v406_v4, %v442_v3 }
 0x30f   :  { %v301_v31 = vadd.f32 %v300_v27, %v299_v24  ;;  %v316_v32 = vadd.f32 %v315_v28, %v314_v25  ;;  %v448_v7 = vmax.f32 %v444_v6, %v446_v5  ;;  %v353_v25 = vshrl.u32 %v352_v23, 7 }
 0x311   :  { %v302_v34 = vadd.f32 %v301_v31, %v249_v17  ;;  %v317_v35 = vrot.slane %v316_v32, 1  ;;  %v453_v11 = vrot.slane %v448_v7, 7  ;;  %v458_v19 = vrot.slane %v448_v7, 6 }
 0x312   :  { %v354_v27 = vsub.s32 0, %v353_v25  ;;  %v363_v31 = vsub.s32 1, %v353_v25  ;;  %v372_v33 = vsub.s32 2, %v353_v25 }
 0x313   :  { %v321_v38 = vrot.slane %v302_v34, 1  ;;  %v318_v39 = vadd.f32 %v317_v35, %v316_v32  ;;  %v455_v16 = vsub.f32 %v423_v63, %v453_v11  ;;  %v460_v22 = vsub.f32 %v440_v2, %v458_v19  ;;  %v583_v19 = vld [vmem:[%s1006_s8] sm:$0xff]  ;;  %s768_s8 = scalar_lea.vmem %s678_s25, 256 }
 0x314   :  { %p769_p0 = scmp.ne.s32.totalorder %s678_s25, %s768_s8  ;;  %p774_p2 = scmp.lt.s32.totalorder %s768_s8, %s768_s8 }
 0x315   :  { %v323_v41 = vmax.f32 %v285_v21, %v321_v38  ;;  %v319_v42 = vadd.f32 %v318_v39, %v249_v17  ;;  %v456_v20 = vmul.f32 1.442695, %v455_v16  ;;  %v461_v24 = vmul.f32 1.442695, %v460_v22 }
 0x316   :  { %p775_p3 = por %p774_p2, %p773_p1 }
 0x317   :  { %v325_v45 = vrot.slane %v319_v42, 2 }
 0x318   :  { %p776_p4 = pnand %p775_p3, %p769_p0 }
 0x319   :  { %v327_v47 = vmax.f32 %v323_v41, %v325_v45 }
 0x31b   :  { %v328_v51 = vsub.f32 %v285_v21, %v327_v47  ;;  %v332_v52 = vrot.slane %v327_v47, 7  ;;  %v337_v53 = vrot.slane %v327_v47, 6  ;;  %v449_v21 = vsub.f32 %v406_v4, %v448_v7 }
 0x31d   :  { %v334_v55 = vsub.f32 %v302_v34, %v332_v52  ;;  %v339_v57 = vsub.f32 %v319_v42, %v337_v53  ;;  %v329_v60 = vmul.f32 1.442695, %v328_v51  ;;  %v450_v17 = vmul.f32 1.442695, %v449_v21 }
 0x31f   :  { %v335_v61 = vmul.f32 1.442695, %v334_v55  ;;  %v340_v62 = vmul.f32 1.442695, %v339_v57 }
 0x321   :  { %752 = vpow2.f32 %v335_v61 }
 0x322   :  { %754 = vpow2.f32 %v340_v62 }
 0x323   :  { %756 = vpow2.f32 %v329_v60 }
 0x32e   :  { %v753_v9 = vpop.eup %752 }
 0x32f   :  { %v755_v10 = vpop.eup %754  ;;  %v343_v12 = vrot.slane %v753_v9, 1 }
 0x330   :  { %v757_v13 = vpop.eup %756  ;;  %v347_v14 = vrot.slane %v755_v10, 2 }
 0x331   :  { %v345_v15 = vadd.f32 %v757_v13, %v343_v12  ;;  %v584_v12 = vld [vmem:[%s1007_s9] sm:$0xff] }
 0x333   :  { %v349_v18 = vadd.f32 %v347_v14, %v345_v15 }
 0x335   :  { %758 = vrcp.f32 %v349_v18  ;;  %v502_v18 = vld [vmem:[%s1003_s5] sm:$0xff]  ;;  %s799_s5 = smov 112  }
 0x336   :  { %760 = vpow2.f32 %v456_v20 }
 0x337   :  { %762 = vpow2.f32 %v450_v17 }
 0x338   :  { %764 = vpow2.f32 %v461_v24 }
 0x342   :  { %v759_v26 = vpop.eup %758 }
 0x343   :  { %v351_v28 = vmul.f32 %v759_v26, %v757_v13  ;;  %v358_v29 = vrot.slane %v759_v26, 7  ;;  %v367_v30 = vrot.slane %v759_v26, 6  ;;  %v761_v38 = vpop.eup %760 }
 0x344   :  { %v464_v39 = vrot.slane %v761_v38, 1  ;;  %v763_v40 = vpop.eup %762 }
 0x345   :  { %v355_v32 = vrot.slane %v351_v28, %v354_v27  ;;  %v360_v34 = vmul.f32 %v753_v9, %v358_v29  ;;  %v369_v35 = vmul.f32 %v755_v10, %v367_v30  ;;  %v765_v41 = vpop.eup %764 }
 0x346   :  { %v466_v42 = vadd.f32 %v763_v40, %v464_v39  ;;  %v468_v43 = vrot.slane %v765_v41, 2 }
 0x347   :  { %v364_v36 = vrot.slane %v360_v34, %v363_v31  ;;  %v373_v37 = vrot.slane %v369_v35, %v372_v33 }
 0x348   :  { %v470_v44 = vadd.f32 %v468_v43, %v466_v42 }
 0x34a   :  { %766 = vrcp.f32 %v470_v44 }
 0x357   :  { %v767_v45 = vpop.eup %766 }
 0x358   :  { %v479_v46 = vrot.slane %v767_v45, 7  ;;  %v472_v48 = vmul.f32 %v767_v45, %v763_v40  ;;  %v488_v50 = vrot.slane %v767_v45, 6 }
 0x35a   :  { %v481_v47 = vmul.f32 %v761_v38, %v479_v46  ;;  %v476_v53 = vrot.slane %v472_v48, %v354_v27  ;;  %v490_v55 = vmul.f32 %v765_v41, %v488_v50 }
 0x35c   :  { %v485_v51 = vrot.slane %v481_v47, %v363_v31  ;;  %v494_v62 = vrot.slane %v490_v55, %v372_v33 }
 0x370   :  { %v412_v52 = vpop.permute.xlu0 %411  ;;  %v395_v54 = vpop.permute.xlu1 %394 }
 0x371   :  { %v414_v57 = vsel %vm270_vm6, %v412_v52, %v930_v49  ;;  %v397_v58 = vsel %vm270_vm6, %v930_v49, %v395_v54 }
 0x372   :  { %v486_v59 = vmul.f32 %v485_v51, %v414_v57  ;;  %v477_v60 = vmul.f32 %v476_v53, %v397_v58 }
 0x374   :  { %v274_v61 = vpop.permute.xlu0 %273  ;;  %v429_v63 = vpop.permute.xlu1 %428  ;;  %v487_v2 = vadd.f32 %v486_v59, %v477_v60 }
 0x375   :  { %v431_v0 = vsel %vm270_vm6, %v429_v63, %v412_v52  ;;  %v276_v4 = vsel %vm270_vm6, %v939_v56, %v274_v61 }
 0x376   :  { %v495_v3 = vmul.f32 %v494_v62, %v431_v0  ;;  %v356_v10 = vmul.f32 %v355_v32, %v276_v4 }
 0x378   :  { %v308_v5 = vpop.permute.xlu0 %307  ;;  %v291_v6 = vpop.permute.xlu1 %290  ;;  %v496_v7 = vadd.f32 %v495_v3, %v487_v2 }
 0x379   :  { %v293_v9 = vsel %vm270_vm6, %v291_v6, %v939_v56  ;;  %v310_v49 = vsel %vm270_vm6, %v308_v5, %v291_v6 }
 0x37a   :  { %v365_v11 = vmul.f32 %v364_v36, %v293_v9  ;;  %498 = vrot.lane.b32.xlu1 %v496_v7, %s790_s15  ;;  %v374_v14 = vmul.f32 %v373_v37, %v310_v49 }
 0x37c   :  { %v366_v13 = vadd.f32 %v365_v11, %v356_v10 }
 0x37e   :  { %v375_v15 = vadd.f32 %v374_v14, %v366_v13  ;;  %587 = vperm.xlu1 %750, %v584_v12  }
 0x385   :  { %v507_v20 = vpop.permute.xlu0 %506 }
 0x3ec   :  { %v499_v16 = vpop.permute.xlu1 %498 }
 0x3ed   :  { %v501_v56 = vsel %vm49_vm1, %v375_v15, %v499_v16 }
 0x3ee   :  { %728 = vmatpush3.msra.mxu0 %v501_v56 }
 0x3ef   :  { %730 = vmatmul.mubr.msk.f32.vlgmr.msra.gmra.mxu0 %vm159_vm4, %v502_v18  ;;  %732 = vmatprep.subr.mxu0 %v791_v1 }
 0x3f0   :  { %733 = vmatpush3.msk.msra.mxu0 %vm63_vm2, %v882_v8  ;;  %734 = vmatprep.mubr.msk.f32.mxu0 %vm792_vm0, %v791_v1 }
 0x3f3   :  { %735 = vmatmul.mubr.msk.f32.vlgmr.msra.gmra.mxu0 %vm254_vm5, %v583_v19 }
 0x3f9   :  { %v588_v17 = vpop.permute.xlu1 %587 }
 0x4af   :  { %v578_v21 = vpop.f32.mrf.mxu0 }
 0x4b0   :  { %v579_v22 = vadd.f32 %v578_v21, %v507_v20 }
 0x4b1   :  { %v731_v23 = vpop.f32.mrf.mxu0 }
 0x4b2   :  { %v582_v25 = vmax.f32 %v579_v22, 0.0 }
 0x4b3   :  { %v659_v24 = vpop.f32.mrf.mxu0 }
 0x4b4   :  { %v660_v26 = vadd.f32 %v659_v24, %v588_v17 }
 0x4b5   :  { %v736_v27 = vpop.f32.mrf.mxu0 }
 0x4b6   :  { %v663_v28 = vadd.f32 %v660_v26, %v582_v25 }
 0x4b8   :  { %v664_v8 = vmax.f32 %v663_v28, 0.0 }
 0x4ba   :  { %665 = vst.msk [vmem:[#allocation2] sm:$0xff] %vm49_vm1, %v664_v8  ;;  %667 = vrot.lane.b32.xlu0 %v664_v8, %s799_s5 }
 0x52c   :  { %v668_v1 = vpop.permute.xlu0 %667 }
 0x52d   :  { %671 = vst.msk [vmem:[#allocation2 + $0x8] sm:$0xff] %vm49_vm1, %v668_v1 }
 0x52e   :  { %779 = shalt.err (!%p776_p4)
}
 0x52f   :  { %s801_s26 = smov 128   ;;  %s802_s27 = smov 8  }
 0x530   :  { %683 = dma.vmem_to_hbm [thread:$0]  %s678_s25, 256, %s1008_s10, [#allocation3], %s801_s26, %s801_s26, %s802_s27  }
 0x531   :  { %788 = dma.done.wait [#allocation3], 256  }
 0x532   :  { %789 = vsyncadd [#allocation3], 4294967040 }
 0x533   :  { %687 = vsyncpa [#allocation3], 1 }

</bundles_post_ra>
